<compile_context>
chip_gen: v5e
topology: v5e:2x2
jax: 0.10.0
libtpu: 0.0.40
codegen_flags: <defaults>
</compile_context>

<pallas_src>
import functools

import jax
import jax.numpy as jnp
from jax.experimental import pallas as pl
from jax.experimental.pallas import tpu as pltpu


# ----------------------------------------------------------------------------
# tiling helpers
# ----------------------------------------------------------------------------
def _round_up(x, m):
    return (x + m - 1) // m * m


def _choose_tm(m):
    return 256 if m >= 256 else _round_up(m, 8)


def _choose_tk(k):
    for cand in (512, 384, 256, 128):
        if k % cand == 0:
            return cand
    return k  # small K (e.g. conv1: 7*7*3 = 147) -> single full-K block


# ----------------------------------------------------------------------------
# Pallas kernels
# ----------------------------------------------------------------------------
def _matmul_bn_act_kernel(*refs, relu, has_res):
    """K-tiled matmul with f32 accumulator; BN scale/bias (+residual, +ReLU)
    fused into the epilogue on the last K step."""
    if has_res:
        a_ref, b_ref, scale_ref, bias_ref, res_ref, o_ref, acc_ref = refs
    else:
        a_ref, b_ref, scale_ref, bias_ref, o_ref, acc_ref = refs
        res_ref = None
    k = pl.program_id(2)

    @pl.when(k == 0)
    def _():
        acc_ref[...] = jnp.zeros_like(acc_ref)

    acc_ref[...] += jnp.dot(a_ref[...], b_ref[...],
                            preferred_element_type=jnp.float32)

    @pl.when(k == pl.num_programs(2) - 1)
    def _():
        out = acc_ref[...] * scale_ref[...] + bias_ref[...]
        if has_res:
            out = out + res_ref[...].astype(jnp.float32)
        if relu:
            out = jnp.maximum(out, 0.0)
        o_ref[...] = out.astype(o_ref.dtype)


def matmul_bn_act(a, b, scale, bias, relu, residual=None):
    """(M,K)@(K,N) in bf16 with f32 accumulation and fused BN/residual/ReLU."""
    M, K = a.shape
    Kb, N = b.shape
    assert K == Kb and N % 128 == 0, (a.shape, b.shape)

    tm = _choose_tm(M)
    Mp = _round_up(M, tm)
    a = a.astype(jnp.bfloat16)
    b = b.astype(jnp.bfloat16)
    if residual is not None:
        residual = residual.astype(jnp.bfloat16)
    if Mp != M:
        a = jnp.pad(a, ((0, Mp - M), (0, 0)))
        if residual is not None:
            residual = jnp.pad(residual, ((0, Mp - M), (0, 0)))

    tn = 256 if N % 256 == 0 else 128
    tk = _choose_tk(K)
    grid = (Mp // tm, N // tn, K // tk)

    in_specs = [
        pl.BlockSpec((tm, tk), lambda i, j, k: (i, k)),
        pl.BlockSpec((tk, tn), lambda i, j, k: (k, j)),
        pl.BlockSpec((1, tn), lambda i, j, k: (0, j)),
        pl.BlockSpec((1, tn), lambda i, j, k: (0, j)),
    ]
    args = [a, b,
            scale.reshape(1, -1).astype(jnp.float32),
            bias.reshape(1, -1).astype(jnp.float32)]
    if residual is not None:
        in_specs.append(pl.BlockSpec((tm, tn), lambda i, j, k: (i, j)))
        args.append(residual)

    out = pl.pallas_call(
        functools.partial(_matmul_bn_act_kernel, relu=relu,
                          has_res=residual is not None),
        out_shape=jax.ShapeDtypeStruct((Mp, N), jnp.bfloat16),
        grid=grid,
        in_specs=in_specs,
        out_specs=pl.BlockSpec((tm, tn), lambda i, j, k: (i, j)),
        scratch_shapes=[pltpu.VMEM((tm, tn), jnp.float32)],
        compiler_params=pltpu.CompilerParams(
            dimension_semantics=("parallel", "parallel", "arbitrary")),
    )(*args)
    return out[:M] if Mp != M else out


def _maxpool9_kernel(*refs):
    o_ref = refs[-1]
    m = refs[0][...]
    for r in refs[1:-1]:
        m = jnp.maximum(m, r[...])
    o_ref[...] = m


def _avgpool_kernel(x_ref, o_ref):
    o_ref[...] = jnp.mean(x_ref[...].astype(jnp.float32), axis=1)


def global_avg_pool(x):
    """x: (N, S, C) -> mean over S -> (N, C) f32 (== AdaptiveAvgPool2d(1)+flatten)."""
    N, S, C = x.shape
    bn = 8 if N % 8 == 0 else N
    return pl.pallas_call(
        _avgpool_kernel,
        out_shape=jax.ShapeDtypeStruct((N, C), jnp.float32),
        grid=(N // bn,),
        in_specs=[pl.BlockSpec((bn, S, C), lambda i: (i, 0, 0))],
        out_specs=pl.BlockSpec((bn, C), lambda i: (i, 0)),
        compiler_params=pltpu.CompilerParams(
            dimension_semantics=("parallel",)),
    )(x)


# ----------------------------------------------------------------------------
# JAX glue: im2col, conv+bn wrapper, pooling, ResNet-18 feature graph
# ----------------------------------------------------------------------------
def im2col(x, kh, kw, stride, pad):
    """x: NHWC (bf16) -> (N*OH*OW, kh*kw*C) patches, column order (kh, kw, c)."""
    N, H, W, C = x.shape
    OH = (H + 2 * pad - kh) // stride + 1
    OW = (W + 2 * pad - kw) // stride + 1
    xp = jnp.pad(x, ((0, 0), (pad, pad), (pad, pad), (0, 0)))
    cols = []
    for i in range(kh):
        for j in range(kw):
            cols.append(xp[:, i:i + stride * OH:stride,
                           j:j + stride * OW:stride, :])
    patches = jnp.stack(cols, axis=3)              # (N, OH, OW, kh*kw, C)
    return patches.reshape(N * OH * OW, kh * kw * C), OH, OW


def conv_bn(x, w_mat, kh, kw, stride, pad, scale, bias, relu, residual=None):
    N = x.shape[0]
    cout = w_mat.shape[1]
    patches, OH, OW = im2col(x, kh, kw, stride, pad)
    res2d = None if residual is None else residual.reshape(-1, cout)
    out = matmul_bn_act(patches, w_mat, scale, bias, relu, residual=res2d)
    return out.reshape(N, OH, OW, cout)


def maxpool3x3_s2(x):
    N, H, W, C = x.shape
    k, stride, pad = 3, 2, 1
    OH = (H + 2 * pad - k) // stride + 1
    OW = (W + 2 * pad - k) // stride + 1
    xp = jnp.pad(x, ((0, 0), (pad, pad), (pad, pad), (0, 0)),
                 constant_values=-jnp.inf)
    wins = [xp[:, i:i + stride * OH:stride, j:j + stride * OW:stride, :]
            .reshape(N * OH * OW, C)
            for i in range(k) for j in range(k)]
    M = N * OH * OW
    tm = _choose_tm(M)
    Mp = _round_up(M, tm)
    if Mp != M:
        wins = [jnp.pad(w, ((0, Mp - M), (0, 0))) for w in wins]
    out = pl.pallas_call(
        _maxpool9_kernel,
        out_shape=jax.ShapeDtypeStruct((Mp, C), x.dtype),
        grid=(Mp // tm,),
        in_specs=[pl.BlockSpec((tm, C), lambda i: (i, 0)) for _ in wins],
        out_specs=pl.BlockSpec((tm, C), lambda i: (i, 0)),
        compiler_params=pltpu.CompilerParams(
            dimension_semantics=("parallel",)),
    )(*wins)
    out = out[:M] if Mp != M else out
    return out.reshape(N, OH, OW, C)


def basic_block(x, blk):
    stride = blk['stride']
    if 'wd' in blk:
        identity = conv_bn(x, blk['wd'], 1, 1, stride, 0,
                           blk['sd'], blk['bd'], relu=False)
    else:
        identity = x
    out = conv_bn(x, blk['w1'], 3, 3, stride, 1,
                  blk['s1'], blk['b1'], relu=True)
    # second conv: BN + residual add + ReLU fused into the matmul epilogue
    out = conv_bn(out, blk['w2'], 3, 3, 1, 1,
                  blk['s2'], blk['b2'], relu=True, residual=identity)
    return out


def feature_audra_forward(params, x_nchw):
    """Equivalent of FeatureAuDrA.forward: ResNet-18 minus final FC, flattened."""
    x = jnp.transpose(x_nchw, (0, 2, 3, 1)).astype(jnp.bfloat16)   # NCHW -> NHWC
    x = conv_bn(x, params['conv1_w'], 7, 7, 2, 3,
                params['conv1_s'], params['conv1_b'], relu=True)
    x = maxpool3x3_s2(x)
    for blocks in params['layers']:
        for blk in blocks:
            x = basic_block(x, blk)
    N, H, W, C = x.shape
    return global_avg_pool(x.reshape(N, H * W, C))                 # (N, 512) f32


# ----------------------------------------------------------------------------
# Deterministic parameter init (synthetic weights, ResNet-18 shapes).
# 64-channel tensors are zero-padded to 128 channels for lane-dense stores;
# padded channels carry exact zeros end-to-end so the math matches the
# unpadded reference.
# ----------------------------------------------------------------------------
def _cpad(c):
    return max(c, 128)


def _conv_w(key, kh, kw, cin, cout, cin_pad, cout_pad):
    w = jax.random.normal(key, (kh, kw, cin, cout), jnp.float32)
    w = w * (2.0 / (kh * kw * cin)) ** 0.5
    w = jnp.pad(w, ((0, 0), (0, 0), (0, cin_pad - cin), (0, cout_pad - cout)))
    # column order (kh, kw, cin) matches im2col flattening
    return w.reshape(kh * kw * cin_pad, cout_pad).astype(jnp.bfloat16)


def _bn(key, c, c_pad, eps=1e-5):
    k1, k2, k3, k4 = jax.random.split(key, 4)
    gamma = 1.0 + 0.1 * jax.random.normal(k1, (c,), jnp.float32)
    beta = 0.1 * jax.random.normal(k2, (c,), jnp.float32)
    mean = 0.1 * jax.random.normal(k3, (c,), jnp.float32)
    var = 0.5 + 0.1 * jnp.abs(jax.random.normal(k4, (c,), jnp.float32))
    scale = gamma / jnp.sqrt(var + eps)          # BN folded (eval mode)
    bias = beta - mean * scale
    scale = jnp.pad(scale, (0, c_pad - c))       # padded channels -> 0 output
    bias = jnp.pad(bias, (0, c_pad - c))
    return scale, bias


def init_resnet18_features(key):
    ks = iter(jax.random.split(key, 64))
    p = {'conv1_w': _conv_w(next(ks), 7, 7, 3, 64, 3, _cpad(64))}
    p['conv1_s'], p['conv1_b'] = _bn(next(ks), 64, _cpad(64))
    layers, cin = [], 64
    for li, cout in enumerate([64, 128, 256, 512]):
        blocks = []
        for bi in range(2):
            stride = 2 if (li > 0 and bi == 0) else 1
            in_c = cin if bi == 0 else cout
            blk = {'stride': stride,
                   'w1': _conv_w(next(ks), 3, 3, in_c, cout,
                                 _cpad(in_c), _cpad(cout)),
                   'w2': _conv_w(next(ks), 3, 3, cout, cout,
                                 _cpad(cout), _cpad(cout))}
            blk['s1'], blk['b1'] = _bn(next(ks), cout, _cpad(cout))
            blk['s2'], blk['b2'] = _bn(next(ks), cout, _cpad(cout))
            if stride != 1 or in_c != cout:
                blk['wd'] = _conv_w(next(ks), 1, 1, in_c, cout,
                                    _cpad(in_c), _cpad(cout))
                blk['sd'], blk['bd'] = _bn(next(ks), cout, _cpad(cout))
            blocks.append(blk)
        layers.append(blocks)
        cin = cout
    p['layers'] = layers
    return p


# ----------------------------------------------------------------------------
if __name__ == "__main__":
    key = jax.random.PRNGKey(0)
    k_param, k_x = jax.random.split(key)
    params = init_resnet18_features(k_param)

    # Small input consistent with the module: NCHW, 3 channels (image input).
    x = jax.random.normal(k_x, (2, 3, 64, 64), jnp.float32)

    feats = feature_audra_forward(params, x)
    feats = jax.block_until_ready(feats)
    assert feats.shape == (2, 512), feats.shape
    assert bool(jnp.all(jnp.isfinite(feats)))
    print("KERNEL_OK")
</pallas_src>

<mosaic_0001>
module attributes {stable_mosaic.version = 11 : i64} {
  func.func @_matmul_bn_act_kernel(%arg0: i32, %arg1: i32, %arg2: i32, %arg3: memref<256x147xbf16, #tpu.memory_space<vmem>>, %arg4: memref<147x128xbf16, #tpu.memory_space<vmem>>, %arg5: memref<1x128xf32, #tpu.memory_space<vmem>>, %arg6: memref<1x128xf32, #tpu.memory_space<vmem>>, %arg7: memref<256x128xbf16, #tpu.memory_space<vmem>>, %arg8: memref<256x128xf32, #tpu.memory_space<vmem>>) attributes {dimension_semantics = [#tpu.dimension_semantics<parallel>, #tpu.dimension_semantics<parallel>, #tpu.dimension_semantics<arbitrary>], iteration_bounds = array<i64: 8, 1, 1>, scalar_prefetch = 0 : i64, scratch_operands = 1 : i64, tpu.core_type = #tpu.core_type<tc>, window_params = [{transform_indices = @transform_0, window_bounds = array<i64: 256, 147>}, {transform_indices = @transform_1, window_bounds = array<i64: 147, 128>}, {transform_indices = @transform_2, window_bounds = array<i64: 1, 128>}, {transform_indices = @transform_3, window_bounds = array<i64: 1, 128>}, {transform_indices = @transform_4, window_bounds = array<i64: 256, 128>}]} {
    %c0_i32 = arith.constant 0 : i32
    %0 = arith.cmpi eq, %arg2, %c0_i32 : i32
    %1 = arith.extui %0 : i1 to i32
    %c0_i32_0 = arith.constant 0 : i32
    %2 = arith.cmpi ne, %1, %c0_i32_0 : i32
    scf.if %2 {
      %cst_10 = arith.constant 0.000000e+00 : f32
      %12 = vector.broadcast %cst_10 : f32 to vector<256x128xf32>
      %c0_11 = arith.constant 0 : index
      %c0_12 = arith.constant 0 : index
      %13 = vector.load %arg8[%c0_11, %c0_12] : memref<256x128xf32, #tpu.memory_space<vmem>>, vector<256x128xf32>
      tpu.vector_store %arg8[%c0_11, %c0_12], %12 {strides = array<i32>} : memref<256x128xf32, #tpu.memory_space<vmem>>, vector<256x128xf32>,
    } else {
    }
    %c0 = arith.constant 0 : index
    %c0_1 = arith.constant 0 : index
    %3 = vector.load %arg8[%c0, %c0_1] : memref<256x128xf32, #tpu.memory_space<vmem>>, vector<256x128xf32>
    %c0_2 = arith.constant 0 : index
    %c0_3 = arith.constant 0 : index
    %4 = vector.load %arg3[%c0_2, %c0_3] : memref<256x147xbf16, #tpu.memory_space<vmem>>, vector<256x147xbf16>
    %c0_4 = arith.constant 0 : index
    %c0_5 = arith.constant 0 : index
    %5 = vector.load %arg4[%c0_4, %c0_5] : memref<147x128xbf16, #tpu.memory_space<vmem>>, vector<147x128xbf16>
    %cst = arith.constant dense<0.000000e+00> : vector<256x128xf32>
    %6 = tpu.matmul %4, %5, %cst {dimension_numbers = #tpu.dot_dimension_numbers<[1], [0], [0], [1], [0, 0, 1, 1], [], []>} : vector<256x147xbf16>, vector<147x128xbf16>, vector<256x128xf32> -> vector<256x128xf32>
    %7 = arith.addf %3, %6 : vector<256x128xf32>
    %c0_6 = arith.constant 0 : index
    %c0_7 = arith.constant 0 : index
    %8 = vector.load %arg8[%c0_6, %c0_7] : memref<256x128xf32, #tpu.memory_space<vmem>>, vector<256x128xf32>
    tpu.vector_store %arg8[%c0_6, %c0_7], %7 {strides = array<i32>} : memref<256x128xf32, #tpu.memory_space<vmem>>, vector<256x128xf32>,
    %c0_i32_8 = arith.constant 0 : i32
    %9 = arith.cmpi eq, %arg2, %c0_i32_8 : i32
    %10 = arith.extui %9 : i1 to i32
    %c0_i32_9 = arith.constant 0 : i32
    %11 = arith.cmpi ne, %10, %c0_i32_9 : i32
    scf.if %11 {
      %c0_10 = arith.constant 0 : index
      %c0_11 = arith.constant 0 : index
      %12 = vector.load %arg8[%c0_10, %c0_11] : memref<256x128xf32, #tpu.memory_space<vmem>>, vector<256x128xf32>
      %c0_12 = arith.constant 0 : index
      %c0_13 = arith.constant 0 : index
      %13 = vector.load %arg5[%c0_12, %c0_13] : memref<1x128xf32, #tpu.memory_space<vmem>>, vector<1x128xf32>
      %14 = vector.broadcast %13 : vector<1x128xf32> to vector<256x128xf32>
      %15 = arith.mulf %12, %14 : vector<256x128xf32>
      %c0_14 = arith.constant 0 : index
      %c0_15 = arith.constant 0 : index
      %16 = vector.load %arg6[%c0_14, %c0_15] : memref<1x128xf32, #tpu.memory_space<vmem>>, vector<1x128xf32>
      %17 = vector.broadcast %16 : vector<1x128xf32> to vector<256x128xf32>
      %18 = arith.addf %15, %17 : vector<256x128xf32>
      %cst_16 = arith.constant 0.000000e+00 : f32
      %19 = vector.broadcast %cst_16 : f32 to vector<256x128xf32>
      %20 = arith.maximumf %18, %19 : vector<256x128xf32>
      %21 = arith.truncf %20 : vector<256x128xf32> to vector<256x128xbf16>
      %c0_17 = arith.constant 0 : index
      %c0_18 = arith.constant 0 : index
      %22 = vector.load %arg7[%c0_17, %c0_18] : memref<256x128xbf16, #tpu.memory_space<vmem>>, vector<256x128xbf16>
      tpu.vector_store %arg7[%c0_17, %c0_18], %21 {strides = array<i32>} : memref<256x128xbf16, #tpu.memory_space<vmem>>, vector<256x128xbf16>,
    } else {
    }
    return
  }
  func.func @transform_0(%arg0: i32, %arg1: i32, %arg2: i32) -> (i32, i32) {
    %c0_i32 = arith.constant 0 : i32
    return %arg0, %arg2 : i32, i32
  }
  func.func @transform_1(%arg0: i32, %arg1: i32, %arg2: i32) -> (i32, i32) {
    %c0_i32 = arith.constant 0 : i32
    return %arg2, %arg1 : i32, i32
  }
  func.func @transform_2(%arg0: i32, %arg1: i32, %arg2: i32) -> (i32, i32) {
    %c0_i32 = arith.constant 0 : i32
    %c0_i32_0 = arith.constant 0 : i32
    return %c0_i32, %arg1 : i32, i32
  }
  func.func @transform_3(%arg0: i32, %arg1: i32, %arg2: i32) -> (i32, i32) {
    %c0_i32 = arith.constant 0 : i32
    %c0_i32_0 = arith.constant 0 : i32
    return %c0_i32, %arg1 : i32, i32
  }
  func.func @transform_4(%arg0: i32, %arg1: i32, %arg2: i32) -> (i32, i32) {
    %c0_i32 = arith.constant 0 : i32
    return %arg0, %arg1 : i32, i32
  }
}

</mosaic_0001>

<bundles_post_ra>
// kernel: tpu_custom_call.1
= control target key start
LH: loop header
LB: loop body
LE: loop exit
PB: predicated region body
PF: predicated region fallthrough
CT: control target
= control target key end

     0   :  { %9 = vsyncpa [#allocation4], 0  ;;  %s2086_s0 = inlined_call_operand.vmem [shape: bf16[2048,147], index: 0, kind: input, shape index: {}]   ;;  %s2087_s1 = inlined_call_operand.vmem [shape: bf16[147,128], index: 1, kind: input, shape index: {}]   ;;  %s2088_s2 = inlined_call_operand.vmem [shape: f32[1,128], index: 2, kind: input, shape index: {}]   ;;  %s2089_s3 = inlined_call_operand.vmem [shape: f32[1,128], index: 3, kind: input, shape index: {}]   ;;  %s2090_s4 = inlined_call_operand.hbm [shape: bf16[2048,128], index: 4, kind: output, shape index: {}]  }
   0x1   :  { %11 = vsyncpa [#allocation4 + $0x1], 0  ;;  %s1775_s15 = smov 0   ;;  %s1777_s16 = smov 0  }
   0x2   :  { %s1779_s17 = smov 0   ;;  %s1781_s18 = smov 0  }
   0x3   :  { %s1783_s19 = smov 0   ;;  %s1785_s20 = smov 0  }
   0x4 LB: > { %s1262_s21 = sadd.s32 4294967295, %s1745_s20   ;;  %s1263_s22 = sadd.s32 4294967294, %s1745_s20   ;;  %s1745_s20 = sphi %s1785_s20, %s17_s20   ;;  %s1741_s19 = sphi %s1783_s19, %s2097_s19   ;;  %s1737_s18 = sphi %s1781_s18, %s2096_s18   ;;  %s1733_s17 = sphi %s1779_s17, %s2095_s17   ;;  %s1729_s16 = sphi %s1777_s16, %s2094_s16   ;;  %s1725_s15 = sphi %s1775_s15, %s2093_s15  }
   0x5   : > { %s36_s23 = sadd.s32 1, %s1741_s19  ;;  %s153_s24 = sadd.s32 1, %s1733_s17 }
   0x6   : > { %p38_p0 = scmp.ge.s32.totalorder %s36_s23, 8  ;;  %p163_p1 = scmp.ne.s32.totalorder %s1733_s17, %s1729_s16 }
   0x7   : > { %p164_p2 = scmp.eq.s32.totalorder %s1262_s21, 7  ;;  %p169_p3 = scmp.ne.s32.totalorder %s1729_s16, %s1725_s15 }
   0x8   : > { %s2099_s23 = smov (%p38_p0, %s36_s23), 0  ;;  %p170_p5 = scmp.eq.s32.totalorder %s1263_s22, 7 }
   0x9   : > { %p1815_p4 = por %p164_p2, %p163_p1  ;;  %s148_s26 = ssub.s32 %s1741_s19, %s2099_s23 }
   0xa   : > { %p1269_p6 = scmp.ge.s32.totalorder %s1745_s20, 1  ;;  %p151_p7 = scmp.eq.s32.totalorder %s148_s26, 0 }
   0xb   : > { %p1822_p8 = por %p170_p5, %p169_p3  ;;  %p227_p9 = scmp.lt.s32.totalorder %s1745_s20, 9 }
   0xc   : > { %s1828_s28 = scalar_select %p151_p7, %s1733_s17, %s153_s24  }
   0xd   : > { %p228_p10 = pnand %p1269_p6, %p227_p9 }
   0xe   : > { %s1271_s7 = sshll.u32 (!%p228_p10), %s1737_s18, 5  ;;  %s269_s22 = sand.u32 (!%p228_p10), 1, %s1729_s16  }
   0xf   : > { %231 = sbr.rel (%p228_p10) target bundleno = 318 (0x13e), region = 36  ;;  %p274_p11 = scmp.lt.s32.totalorder (!%p228_p10), %s1271_s7, 255 }
  0x10   : > { %s1501_s29 = sshll.u32 (!%p228_p10), %s1737_s18, 7  ;;  %s1123_s8 = scalar_lea.sflag (!%p228_p10), [#allocation4], %s269_s22 }
  0x11   : > { %s1135_s6 = scalar_lea.hbm (!%p228_p10), %s2090_s4, %s1501_s29  ;;  %s1687_s13 = scalar_lea.hbm (!%p228_p10), %s2090_s4, 1024 }
  0x14   : > { %v1499_v0 = vld [vmem:[%s2087_s1 + $0x38] sm:$0xff]  ;;  %v419_v1 = vld [vmem:[%s2087_s1 + $0x48] sm:$0x3]  ;;  %vm670_vm0 = vcmask 1040384   ;;  %vm671_vm1 = vcmask 1041408   ;;  %v1498_v3 = vld [vmem:[%s2087_s1 + $0x30] sm:$0xff] }
  0x15   : > { %v601_v2 = vunpack.c.l.b16 %v419_v1  ;;  %677 = vmatpush.bf16.msra.mxu0 %v1499_v0  ;;  %1597 = vmatpush.bf16.msra.mxu2 %v1499_v0  ;;  %v1747_v4 = vmov 65535   ;;  %s2101_s7 = smov (!%p274_p11, %s1271_s7), 255  ;;  %v1497_v9 = vld [vmem:[%s2087_s1 + $0x28] sm:$0xff]  ;;  %v1500_v10 = vld [vmem:[%s2087_s1 + $0x40] sm:$0xff]  ;;  %vm621_vm2 = vcmask 154624   ;;  %v1495_v18 = vld [vmem:[%s2087_s1 + $0x18] sm:$0xff] }
  0x16   : > { %v672_v5 = vsel %vm670_vm0, 4294967295, %v1747_v4  ;;  %s1459_s12 = sshll.u32 %s2101_s7, 3  ;;  %v1496_v14 = vld [vmem:[%s2087_s1 + $0x20] sm:$0xff]  ;;  %v1494_v19 = vld [vmem:[%s2087_s1 + $0x10] sm:$0xff]  ;;  %v1493_v20 = vld [vmem:[%s2087_s1 + $0x8] sm:$0xff]  ;;  %s1138_s7 = sshll.u32 %s1135_s6, 4  ;;  %s1139_s7 = int_to_ptr.hbm [resolvable:$true] %s1138_s7 }
  0x17   : > { %v611_v6 = vpack.c.b16 %v601_v2, %v601_v2  ;;  %v673_v7 = vsel %vm671_vm1, %v672_v5, 0  ;;  %s1849_s24 = scalar_lea.vmem %s2086_s0, %s1459_s12  ;;  %v1492_v26 = vld [vmem:[%s2087_s1] sm:$0xff]  ;;  %s1681_s9 = sshra.s32 %s1139_s7, 4  ;;  %s1682_s9 = int_to_ptr.hbm [resolvable:$true] %s1681_s9 }
  0x18   : > { %v1460_v11 = vld [vmem:[%s1849_s24 + $0x4] sm:$0xf]  ;;  %v1278_v12 = vld [vmem:[%s1849_s24 + $0x8] sm:$0xf0]  ;;  %v1478_v15 = vld [vmem:[%s1849_s24 + $0x94] sm:$0xf]  ;;  %p1688_p1 = scmp.lt.s32.totalorder %s1682_s9, %s2090_s4 }
  0x19   : > { %v675_v8 = vand.u32 %v673_v7, %v611_v6  ;;  %678 = vmatpush.bf16.msra.mxu0 %v1498_v3  ;;  %1598 = vmatpush.bf16.msra.mxu2 %v1498_v3  ;;  %v1281_v13 = vor.u32 %v1460_v11, %v1278_v12  ;;  %v1350_v16 = vld [vmem:[%s1849_s24 + $0x98] sm:$0xf0]  ;;  %v1462_v21 = vld [vmem:[%s1849_s24 + $0x14] sm:$0xf]  ;;  %v1480_v23 = vld [vmem:[%s1849_s24 + $0xa4] sm:$0xf] }
  0x1a   : > { %v1353_v17 = vor.u32 %v1478_v15, %v1350_v16  ;;  %v1286_v22 = vld [vmem:[%s1849_s24 + $0x18] sm:$0xf0]  ;;  %v1358_v24 = vld [vmem:[%s1849_s24 + $0xa8] sm:$0xf0]  ;;  %v1276_v27 = vld [vmem:[%s1849_s24] sm:$0xf] }
  0x1b   : > { %772 = vmatpush.bf16.msra.mxu1 %v675_v8  ;;  %1605 = vmatpush.bf16.msra.mxu3 %v675_v8  ;;  %v1289_v25 = vor.u32 %v1462_v21, %v1286_v22  ;;  %v1461_v28 = vld [vmem:[%s1849_s24 + $0x4] sm:$0xf0]  ;;  %v1340_v29 = vld [vmem:[%s1849_s24 + $0x80] sm:$0xf]  ;;  %v1361_v31 = vor.u32 %v1480_v23, %v1358_v24  ;;  %v1464_v34 = vld [vmem:[%s1849_s24 + $0x24] sm:$0xf] }
  0x1c   : > { %v1477_v30 = vld [vmem:[%s1849_s24 + $0x84] sm:$0xf0]  ;;  %v1277_v32 = vor.u32 %v1461_v28, %v1276_v27  ;;  %v1294_v35 = vld [vmem:[%s1849_s24 + $0x28] sm:$0xf0]  ;;  %v1482_v36 = vld [vmem:[%s1849_s24 + $0xb4] sm:$0xf] }
  0x1d   : > { %679 = vmatpush.bf16.msra.mxu0 %v1497_v9  ;;  %1599 = vmatpush.bf16.msra.mxu2 %v1497_v9  ;;  %v1341_v33 = vor.u32 %v1477_v30, %v1340_v29  ;;  %v1366_v37 = vld [vmem:[%s1849_s24 + $0xb8] sm:$0xf0]  ;;  %v1297_v38 = vor.u32 %v1464_v34, %v1294_v35  ;;  %v1284_v39 = vld [vmem:[%s1849_s24 + $0x10] sm:$0xf]  ;;  %v1463_v40 = vld [vmem:[%s1849_s24 + $0x14] sm:$0xf0] }
  0x1e   : > { %v1348_v41 = vld [vmem:[%s1849_s24 + $0x90] sm:$0xf]  ;;  %v1479_v42 = vld [vmem:[%s1849_s24 + $0x94] sm:$0xf0]  ;;  %v1369_v43 = vor.u32 %v1482_v36, %v1366_v37  ;;  %v1285_v44 = vor.u32 %v1463_v40, %v1284_v39  ;;  %v1466_v46 = vld [vmem:[%s1849_s24 + $0x34] sm:$0xf] }
  0x1f   : > { %773 = vmatpush.bf16.msra.mxu1 %v1500_v10  ;;  %1606 = vmatpush.bf16.msra.mxu3 %v1500_v10  ;;  %v1349_v45 = vor.u32 %v1479_v42, %v1348_v41  ;;  %v1302_v47 = vld [vmem:[%s1849_s24 + $0x38] sm:$0xf0]  ;;  %v1484_v48 = vld [vmem:[%s1849_s24 + $0xc4] sm:$0xf]  ;;  %v1374_v49 = vld [vmem:[%s1849_s24 + $0xc8] sm:$0xf0] }
  0x20   : > { %v1305_v50 = vor.u32 %v1466_v46, %v1302_v47  ;;  %v1292_v51 = vld [vmem:[%s1849_s24 + $0x20] sm:$0xf]  ;;  %v1465_v52 = vld [vmem:[%s1849_s24 + $0x24] sm:$0xf0]  ;;  %v1377_v55 = vor.u32 %v1484_v48, %v1374_v49  ;;  %v1468_v58 = vld [vmem:[%s1849_s24 + $0x44] sm:$0xf] }
  0x21   : > { %680 = vmatpush.bf16.msra.mxu0 %v1496_v14  ;;  %1600 = vmatpush.bf16.msra.mxu2 %v1496_v14  ;;  %v1356_v53 = vld [vmem:[%s1849_s24 + $0xa0] sm:$0xf]  ;;  %v1481_v54 = vld [vmem:[%s1849_s24 + $0xa4] sm:$0xf0]  ;;  %v1293_v56 = vor.u32 %v1465_v52, %v1292_v51  ;;  %v1310_v59 = vld [vmem:[%s1849_s24 + $0x48] sm:$0xf0] }
  0x22   : > { %1438 = vmatmul.msk.bf16.vlgmr.msra.gmra.mxu1 %vm621_vm2, %v1281_v13  ;;  %1447 = vmatmul.msk.bf16.vlgmr.msra.gmra.mxu3 %vm621_vm2, %v1353_v17  ;;  %v1357_v57 = vor.u32 %v1481_v54, %v1356_v53  ;;  %v1486_v60 = vld [vmem:[%s1849_s24 + $0xd4] sm:$0xf]  ;;  %v1382_v61 = vld [vmem:[%s1849_s24 + $0xd8] sm:$0xf0]  ;;  %v1313_v62 = vor.u32 %v1468_v58, %v1310_v59  ;;  %v1300_v63 = vld [vmem:[%s1849_s24 + $0x30] sm:$0xf] }
  0x23   : > { %v1467_v0 = vld [vmem:[%s1849_s24 + $0x34] sm:$0xf0]  ;;  %v1364_v1 = vld [vmem:[%s1849_s24 + $0xb0] sm:$0xf]  ;;  %v1385_v3 = vor.u32 %v1486_v60, %v1382_v61  ;;  %v1470_v6 = vld [vmem:[%s1849_s24 + $0x54] sm:$0xf] }
  0x24   : > { %v1483_v2 = vld [vmem:[%s1849_s24 + $0xb4] sm:$0xf0]  ;;  %v1301_v4 = vor.u32 %v1467_v0, %v1300_v63  ;;  %v1318_v7 = vld [vmem:[%s1849_s24 + $0x58] sm:$0xf0]  ;;  %v1488_v8 = vld [vmem:[%s1849_s24 + $0xe4] sm:$0xf] }
  0x25   : > { %681 = vmatpush.bf16.msra.mxu0 %v1495_v18  ;;  %1601 = vmatpush.bf16.msra.mxu2 %v1495_v18  ;;  %v1365_v5 = vor.u32 %v1483_v2, %v1364_v1  ;;  %v1390_v9 = vld [vmem:[%s1849_s24 + $0xe8] sm:$0xf0]  ;;  %v1321_v10 = vor.u32 %v1470_v6, %v1318_v7  ;;  %v1308_v11 = vld [vmem:[%s1849_s24 + $0x40] sm:$0xf]  ;;  %v1469_v12 = vld [vmem:[%s1849_s24 + $0x44] sm:$0xf0] }
  0x26   : > { %v1372_v13 = vld [vmem:[%s1849_s24 + $0xc0] sm:$0xf]  ;;  %v1485_v14 = vld [vmem:[%s1849_s24 + $0xc4] sm:$0xf0]  ;;  %v1393_v15 = vor.u32 %v1488_v8, %v1390_v9  ;;  %v1309_v16 = vor.u32 %v1469_v12, %v1308_v11  ;;  %v1472_v18 = vld [vmem:[%s1849_s24 + $0x64] sm:$0xf] }
  0x27   : > { %v1373_v17 = vor.u32 %v1485_v14, %v1372_v13  ;;  %v1398_v21 = vld [vmem:[%s1849_s24 + $0xf8] sm:$0xf0]  ;;  %v1316_v23 = vld [vmem:[%s1849_s24 + $0x50] sm:$0xf]  ;;  %v1471_v24 = vld [vmem:[%s1849_s24 + $0x54] sm:$0xf0] }
  0x28   : > { %v1317_v28 = vor.u32 %v1471_v24, %v1316_v23  ;;  %v1474_v30 = vld [vmem:[%s1849_s24 + $0x74] sm:$0xf]  ;;  %v1473_v34 = vld [vmem:[%s1849_s24 + $0x64] sm:$0xf0]  ;;  %v1388_v35 = vld [vmem:[%s1849_s24 + $0xe0] sm:$0xf] }
  0x29   : > { %682 = vmatpush.bf16.msra.mxu0 %v1494_v19  ;;  %1602 = vmatpush.bf16.msra.mxu2 %v1494_v19  ;;  %v1326_v19 = vld [vmem:[%s1849_s24 + $0x68] sm:$0xf0]  ;;  %v1489_v36 = vld [vmem:[%s1849_s24 + $0xe4] sm:$0xf0]  ;;  %v1476_v39 = vld [vmem:[%s1849_s24 + $0x84] sm:$0xf] }
  0x2a   : > { %v1329_v22 = vor.u32 %v1472_v18, %v1326_v19  ;;  %v1342_v40 = vld [vmem:[%s1849_s24 + $0x88] sm:$0xf0]  ;;  %v1332_v42 = vld [vmem:[%s1849_s24 + $0x70] sm:$0xf]  ;;  %v1491_v46 = vld [vmem:[%s1849_s24 + $0xf4] sm:$0xf0] }
  0x2b   : > { %v1345_v41 = vor.u32 %v1476_v39, %v1342_v40  ;;  %v1949_v54 = vld [vmem:[%s2088_s2] ss:$0 sm:$0xff]  ;;  %s1683_s10 = scalar_lea.hbm %s1682_s9, 128 }
  0x2c   : > { %p1684_p12 = scmp.ne.s32.totalorder %s1682_s9, %s1683_s10  ;;  %p1689_p2 = scmp.lt.s32.totalorder %s1687_s13, %s1683_s10 }
  0x2d   : > { %683 = vmatpush.bf16.msra.mxu0 %v1493_v20  ;;  %1603 = vmatpush.bf16.msra.mxu2 %v1493_v20  ;;  %v1490_v20 = vld [vmem:[%s1849_s24 + $0xf4] sm:$0xf] }
  0x2e   : > { %v1401_v27 = vor.u32 %v1490_v20, %v1398_v21  ;;  %p1685_p13 = pnand %p1684_p12, %p1815_p4  ;;  %p1690_p3 = por %p1689_p2, %p1688_p1 }
  0x30   : > { %p1686_p0 = pneg %p1685_p13 }
  0x31   : > { %684 = vmatpush.bf16.msra.mxu0 %v1492_v26  ;;  %1604 = vmatpush.bf16.msra.mxu2 %v1492_v26  ;;  %v1487_v26 = vld [vmem:[%s1849_s24 + $0xd4] sm:$0xf0] }
  0x32   : > { %1439 = vmatmul.msk.bf16.gmra.mxu1 %vm621_vm2, %v1289_v25  ;;  %1448 = vmatmul.msk.bf16.gmra.mxu3 %vm621_vm2, %v1361_v31  ;;  %v1380_v25 = vld [vmem:[%s1849_s24 + $0xd0] sm:$0xf]  ;;  %v1334_v31 = vld [vmem:[%s1849_s24 + $0x78] sm:$0xf0]  ;;  %p1691_p5 = pnand %p1690_p3, %p1686_p0 }
  0x33   : > { %v1381_v29 = vor.u32 %v1487_v26, %v1380_v25 }
  0x34   : > { %685 = vmatmul.bf16.vlgmr.msra.gmra.mxu0 %v1277_v32  ;;  %725 = vmatmul.bf16.vlgmr.msra.gmra.mxu2 %v1341_v33  ;;  %v1337_v32 = vor.u32 %v1474_v30, %v1334_v31  ;;  %v1324_v33 = vld [vmem:[%s1849_s24 + $0x60] sm:$0xf] }
  0x35   : > { %v1325_v37 = vor.u32 %v1473_v34, %v1324_v33 }
  0x42   : > { %1440 = vmatmul.msk.bf16.gmra.mxu1 %vm621_vm2, %v1297_v38  ;;  %1449 = vmatmul.msk.bf16.gmra.mxu3 %vm621_vm2, %v1369_v43  ;;  %v1389_v38 = vor.u32 %v1489_v36, %v1388_v35  ;;  %v1475_v43 = vld [vmem:[%s1849_s24 + $0x74] sm:$0xf0] }
  0x43   : > { %v1333_v47 = vor.u32 %v1475_v43, %v1332_v42 }
  0x44   : > { %690 = vmatmul.bf16.gmra.mxu0 %v1285_v44  ;;  %730 = vmatmul.bf16.gmra.mxu2 %v1349_v45  ;;  %v1396_v45 = vld [vmem:[%s1849_s24 + $0xf0] sm:$0xf]  ;;  %s1270_s24 = sshll.u32 %s269_s22, 7 }
  0x45   : > { %v1397_v48 = vor.u32 %v1491_v46, %v1396_v45  ;;  %s1967_s26 = scalar_lea.vmem [#allocation3], %s1270_s24 }
  0x46   : > { %s1136_s18 = sshll.u32 %s1967_s26, 4  ;;  %s1137_s18 = int_to_ptr.vmem [resolvable:$true] %s1136_s18 }
  0x52   : > { %1441 = vmatmul.msk.bf16.gmra.mxu1 %vm621_vm2, %v1305_v50  ;;  %1450 = vmatmul.msk.bf16.gmra.mxu3 %vm621_vm2, %v1377_v55 }
  0x54   : > { %695 = vmatmul.bf16.gmra.mxu0 %v1293_v56  ;;  %735 = vmatmul.bf16.gmra.mxu2 %v1357_v57  ;;  %v1955_v57 = vld [vmem:[%s2089_s3] ss:$0 sm:$0xff] }
  0x62   : > { %1442 = vmatmul.msk.bf16.gmra.mxu1 %vm621_vm2, %v1313_v62  ;;  %1451 = vmatmul.msk.bf16.gmra.mxu3 %vm621_vm2, %v1385_v3 }
  0x64   : > { %700 = vmatmul.bf16.gmra.mxu0 %v1301_v4  ;;  %740 = vmatmul.bf16.gmra.mxu2 %v1365_v5 }
  0x72   : > { %1443 = vmatmul.msk.bf16.gmra.mxu1 %vm621_vm2, %v1321_v10  ;;  %1452 = vmatmul.msk.bf16.gmra.mxu3 %vm621_vm2, %v1393_v15 }
  0x74   : > { %705 = vmatmul.bf16.gmra.mxu0 %v1309_v16  ;;  %745 = vmatmul.bf16.gmra.mxu2 %v1373_v17 }
  0x82   : > { %1444 = vmatmul.msk.bf16.gmra.mxu1 %vm621_vm2, %v1329_v22  ;;  %1453 = vmatmul.msk.bf16.gmra.mxu3 %vm621_vm2, %v1401_v27 }
  0x84   : > { %710 = vmatmul.bf16.gmra.mxu0 %v1317_v28  ;;  %750 = vmatmul.bf16.gmra.mxu2 %v1381_v29 }
  0x92   : > { %1445 = vmatmul.msk.bf16.gmra.mxu1 %vm621_vm2, %v1337_v32 }
  0x94   : > { %715 = vmatmul.bf16.gmra.mxu0 %v1325_v37  ;;  %755 = vmatmul.bf16.gmra.mxu2 %v1389_v38 }
  0x9f   : > { %v775_v44 = vpop.f32.mrf.mxu1 }
  0xa2   : > { %1446 = vmatmul.msk.bf16.gmra.mxu1 %vm621_vm2, %v1345_v41 }
  0xa4   : > { %720 = vmatmul.bf16.gmra.mxu0 %v1333_v47  ;;  %760 = vmatmul.bf16.gmra.mxu2 %v1397_v48 }
  0xa5   : > { %v820_v51 = vpop.f32.mrf.mxu3 }
  0xa7   : > { %v777_v49 = vpop.f32.mrf.mxu1 }
  0xad   : > { %v822_v59 = vpop.f32.mrf.mxu3 }
  0xaf   : > { %v780_v50 = vpop.f32.mrf.mxu1 }
  0xb1   : > { %v686_v52 = vpop.f32.mrf.mxu0 }
  0xb2   : > { %v776_v53 = vadd.f32 %v775_v44, %v686_v52 }
  0xb4   : > { %v958_v56 = vmul.f32 %v1949_v54, %v776_v53 }
  0xb5   : > { %v825_v7 = vpop.f32.mrf.mxu3 }
  0xb6   : > { %v994_v62 = vadd.f32 %v1955_v57, %v958_v56 }
  0xb7   : > { %v782_v55 = vpop.f32.mrf.mxu1  ;;  %v1957_v58 = vpop.f32.mrf.mxu2 }
  0xb8   : > { %v1026_v2 = vmax.f32 %v994_v62, 0.0 }
  0xb9   : > { %v688_v60 = vpop.f32.mrf.mxu0 }
  0xba   : > { %v778_v61 = vadd.f32 %v777_v49, %v688_v60 }
  0xbc   : > { %v959_v63 = vmul.f32 %v1949_v54, %v778_v61 }
  0xbd   : > { %v827_v17 = vpop.f32.mrf.mxu3 }
  0xbe   : > { %v995_v0 = vadd.f32 %v1955_v57, %v959_v63 }
  0xbf   : > { %v785_v1 = vpop.f32.mrf.mxu1  ;;  %v1965_v4 = vpop.f32.mrf.mxu2 }
  0xc0   : > { %v1027_v3 = vmax.f32 %v995_v0, 0.0 }
  0xc1   : > { %v691_v5 = vpop.f32.mrf.mxu0 }
  0xc2   : > { %v1505_v6 = vpack.c.bf16 %v1027_v3, %v1026_v2  ;;  %v781_v8 = vadd.f32 %v780_v50, %v691_v5 }
  0xc4   : > { %1506 = vst [vmem:[%s1967_s26] sm:$0xff] %v1505_v6   ;;  %v960_v10 = vmul.f32 %v1949_v54, %v781_v8 }
  0xc5   : > { %v830_v32 = vpop.f32.mrf.mxu3 }
  0xc6   : > { %v996_v15 = vadd.f32 %v1955_v57, %v960_v10 }
  0xc7   : > { %v787_v9 = vpop.f32.mrf.mxu1  ;;  %v731_v11 = vpop.f32.mrf.mxu2 }
  0xc8   : > { %v821_v14 = vadd.f32 %v820_v51, %v731_v11  ;;  %v1028_v21 = vmax.f32 %v996_v15, 0.0 }
  0xc9   : > { %v693_v12 = vpop.f32.mrf.mxu0 }
  0xca   : > { %v783_v13 = vadd.f32 %v782_v55, %v693_v12  ;;  %v976_v20 = vmul.f32 %v1949_v54, %v821_v14 }
  0xcc   : > { %v961_v16 = vmul.f32 %v1949_v54, %v783_v13  ;;  %v1012_v27 = vadd.f32 %v1955_v57, %v976_v20 }
  0xcd   : > { %v832_v49 = vpop.f32.mrf.mxu3 }
  0xce   : > { %v997_v18 = vadd.f32 %v1955_v57, %v961_v16  ;;  %v1044_v33 = vmax.f32 %v1012_v27, 0.0 }
  0xcf   : > { %v790_v19 = vpop.f32.mrf.mxu1  ;;  %v733_v23 = vpop.f32.mrf.mxu2 }
  0xd0   : > { %v1029_v22 = vmax.f32 %v997_v18, 0.0  ;;  %v823_v24 = vadd.f32 %v822_v59, %v733_v23 }
  0xd1   : > { %v696_v25 = vpop.f32.mrf.mxu0 }
  0xd2   : > { %v1510_v26 = vpack.c.bf16 %v1029_v22, %v1028_v21  ;;  %v977_v28 = vmul.f32 %v1949_v54, %v823_v24  ;;  %v786_v29 = vadd.f32 %v785_v1, %v696_v25 }
  0xd4   : > { %1582 = vst [vmem:[%s1967_s26 + $0x8] sm:$0xff] %v1510_v26   ;;  %v1013_v30 = vadd.f32 %v1955_v57, %v977_v28  ;;  %v962_v35 = vmul.f32 %v1949_v54, %v786_v29 }
  0xd5   : > { %v835_v5 = vpop.f32.mrf.mxu3 }
  0xd6   : > { %v1045_v34 = vmax.f32 %v1013_v30, 0.0  ;;  %v998_v41 = vadd.f32 %v1955_v57, %v962_v35 }
  0xd7   : > { %v792_v31 = vpop.f32.mrf.mxu1  ;;  %v736_v36 = vpop.f32.mrf.mxu2 }
  0xd8   : > { %v1550_v37 = vpack.c.bf16 %v1045_v34, %v1044_v33  ;;  %v826_v40 = vadd.f32 %v825_v7, %v736_v36  ;;  %v1030_v46 = vmax.f32 %v998_v41, 0.0 }
  0xd9   : > { %v698_v38 = vpop.f32.mrf.mxu0 }
  0xda   : > { %v788_v39 = vadd.f32 %v787_v9, %v698_v38  ;;  %1590 = vst [vmem:[%s1967_s26 + $0x48] sm:$0xff] %v1550_v37   ;;  %v978_v45 = vmul.f32 %v1949_v54, %v826_v40 }
  0xdc   : > { %v963_v42 = vmul.f32 %v1949_v54, %v788_v39  ;;  %v1014_v53 = vadd.f32 %v1955_v57, %v978_v45 }
  0xdd   : > { %v837_v21 = vpop.f32.mrf.mxu3 }
  0xde   : > { %v999_v43 = vadd.f32 %v1955_v57, %v963_v42  ;;  %v1046_v61 = vmax.f32 %v1014_v53, 0.0 }
  0xdf   : > { %v795_v44 = vpop.f32.mrf.mxu1  ;;  %v738_v48 = vpop.f32.mrf.mxu2 }
  0xe0   : > { %v1031_v47 = vmax.f32 %v999_v43, 0.0  ;;  %v828_v50 = vadd.f32 %v827_v17, %v738_v48 }
  0xe1   : > { %v701_v51 = vpop.f32.mrf.mxu0 }
  0xe2   : > { %v1515_v52 = vpack.c.bf16 %v1031_v47, %v1030_v46  ;;  %v979_v55 = vmul.f32 %v1949_v54, %v828_v50  ;;  %v791_v56 = vadd.f32 %v790_v19, %v701_v51 }
  0xe4   : > { %1583 = vst [vmem:[%s1967_s26 + $0x10] sm:$0xff] %v1515_v52   ;;  %v1015_v59 = vadd.f32 %v1955_v57, %v979_v55  ;;  %v964_v63 = vmul.f32 %v1949_v54, %v791_v56 }
  0xe5   : > { %v840_v36 = vpop.f32.mrf.mxu3 }
  0xe6   : > { %v1047_v62 = vmax.f32 %v1015_v59, 0.0  ;;  %v1000_v7 = vadd.f32 %v1955_v57, %v964_v63 }
  0xe7   : > { %v797_v60 = vpop.f32.mrf.mxu1  ;;  %v741_v0 = vpop.f32.mrf.mxu2 }
  0xe8   : > { %v1555_v1 = vpack.c.bf16 %v1047_v62, %v1046_v61  ;;  %v831_v6 = vadd.f32 %v830_v32, %v741_v0  ;;  %v1032_v12 = vmax.f32 %v1000_v7, 0.0 }
  0xe9   : > { %v703_v2 = vpop.f32.mrf.mxu0 }
  0xea   : > { %v793_v3 = vadd.f32 %v792_v31, %v703_v2  ;;  %1591 = vst [vmem:[%s1967_s26 + $0x50] sm:$0xff] %v1555_v1   ;;  %v980_v11 = vmul.f32 %v1949_v54, %v831_v6 }
  0xec   : > { %v965_v8 = vmul.f32 %v1949_v54, %v793_v3  ;;  %v1016_v18 = vadd.f32 %v1955_v57, %v980_v11 }
  0xed   : > { %v842_v53 = vpop.f32.mrf.mxu3 }
  0xee   : > { %v1001_v9 = vadd.f32 %v1955_v57, %v965_v8  ;;  %v1048_v24 = vmax.f32 %v1016_v18, 0.0 }
  0xef   : > { %v800_v10 = vpop.f32.mrf.mxu1  ;;  %v743_v14 = vpop.f32.mrf.mxu2 }
  0xf0   : > { %v1033_v13 = vmax.f32 %v1001_v9, 0.0  ;;  %v833_v15 = vadd.f32 %v832_v49, %v743_v14 }
  0xf1   : > { %v706_v16 = vpop.f32.mrf.mxu0 }
  0xf2   : > { %v1520_v17 = vpack.c.bf16 %v1033_v13, %v1032_v12  ;;  %v981_v19 = vmul.f32 %v1949_v54, %v833_v15  ;;  %v796_v20 = vadd.f32 %v795_v44, %v706_v16 }
  0xf4   : > { %1584 = vst [vmem:[%s1967_s26 + $0x18] sm:$0xff] %v1520_v17   ;;  %v1017_v22 = vadd.f32 %v1955_v57, %v981_v19  ;;  %v966_v26 = vmul.f32 %v1949_v54, %v796_v20 }
  0xf5   : > { %v845_v9 = vpop.f32.mrf.mxu3 }
  0xf6   : > { %v1049_v25 = vmax.f32 %v1017_v22, 0.0  ;;  %v1002_v32 = vadd.f32 %v1955_v57, %v966_v26 }
  0xf7   : > { %v802_v23 = vpop.f32.mrf.mxu1  ;;  %v746_v27 = vpop.f32.mrf.mxu2 }
  0xf8   : > { %v1560_v28 = vpack.c.bf16 %v1049_v25, %v1048_v24  ;;  %v836_v31 = vadd.f32 %v835_v5, %v746_v27  ;;  %v1034_v38 = vmax.f32 %v1002_v32, 0.0 }
  0xf9   : > { %v708_v29 = vpop.f32.mrf.mxu0 }
  0xfa   : > { %v798_v30 = vadd.f32 %v797_v60, %v708_v29  ;;  %1592 = vst [vmem:[%s1967_s26 + $0x58] sm:$0xff] %v1560_v28   ;;  %v982_v37 = vmul.f32 %v1949_v54, %v836_v31 }
  0xfc   : > { %v967_v33 = vmul.f32 %v1949_v54, %v798_v30  ;;  %v1018_v44 = vadd.f32 %v1955_v57, %v982_v37 }
  0xfd   : > { %v847_v24 = vpop.f32.mrf.mxu3 }
  0xfe   : > { %v1003_v34 = vadd.f32 %v1955_v57, %v967_v33  ;;  %v1050_v49 = vmax.f32 %v1018_v44, 0.0 }
  0xff   : > { %v805_v35 = vpop.f32.mrf.mxu1  ;;  %v748_v40 = vpop.f32.mrf.mxu2 }
 0x100   : > { %v1035_v39 = vmax.f32 %v1003_v34, 0.0  ;;  %v838_v41 = vadd.f32 %v837_v21, %v748_v40 }
 0x101   : > { %v711_v42 = vpop.f32.mrf.mxu0 }
 0x102   : > { %v1525_v43 = vpack.c.bf16 %v1035_v39, %v1034_v38  ;;  %v983_v45 = vmul.f32 %v1949_v54, %v838_v41  ;;  %v801_v46 = vadd.f32 %v800_v10, %v711_v42 }
 0x104   : > { %1585 = vst [vmem:[%s1967_s26 + $0x20] sm:$0xff] %v1525_v43   ;;  %v1019_v47 = vadd.f32 %v1955_v57, %v983_v45  ;;  %v968_v51 = vmul.f32 %v1949_v54, %v801_v46 }
 0x105   : > { %v850_v41 = vpop.f32.mrf.mxu3 }
 0x106   : > { %v1051_v50 = vmax.f32 %v1019_v47, 0.0  ;;  %v1004_v61 = vadd.f32 %v1955_v57, %v968_v51 }
 0x107   : > { %v807_v48 = vpop.f32.mrf.mxu1  ;;  %v751_v52 = vpop.f32.mrf.mxu2 }
 0x108   : > { %v1565_v55 = vpack.c.bf16 %v1051_v50, %v1050_v49  ;;  %v841_v60 = vadd.f32 %v840_v36, %v751_v52  ;;  %v1036_v2 = vmax.f32 %v1004_v61, 0.0 }
 0x109   : > { %v713_v56 = vpop.f32.mrf.mxu0 }
 0x10a   : > { %v803_v59 = vadd.f32 %v802_v23, %v713_v56  ;;  %1593 = vst [vmem:[%s1967_s26 + $0x60] sm:$0xff] %v1565_v55   ;;  %v984_v1 = vmul.f32 %v1949_v54, %v841_v60 }
 0x10c   : > { %v969_v62 = vmul.f32 %v1949_v54, %v803_v59  ;;  %v1020_v10 = vadd.f32 %v1955_v57, %v984_v1 }
 0x10e   : > { %v1005_v63 = vadd.f32 %v1955_v57, %v969_v62  ;;  %v1052_v15 = vmax.f32 %v1020_v10, 0.0 }
 0x10f   : > { %v810_v0 = vpop.f32.mrf.mxu1  ;;  %v753_v5 = vpop.f32.mrf.mxu2 }
 0x110   : > { %v1037_v3 = vmax.f32 %v1005_v63, 0.0  ;;  %v843_v6 = vadd.f32 %v842_v53, %v753_v5 }
 0x111   : > { %v716_v7 = vpop.f32.mrf.mxu0 }
 0x112   : > { %v1530_v8 = vpack.c.bf16 %v1037_v3, %v1036_v2  ;;  %v985_v11 = vmul.f32 %v1949_v54, %v843_v6  ;;  %v806_v12 = vadd.f32 %v805_v35, %v716_v7 }
 0x114   : > { %1586 = vst [vmem:[%s1967_s26 + $0x28] sm:$0xff] %v1530_v8   ;;  %v1021_v13 = vadd.f32 %v1955_v57, %v985_v11  ;;  %v970_v17 = vmul.f32 %v1949_v54, %v806_v12 }
 0x116   : > { %v1053_v16 = vmax.f32 %v1021_v13, 0.0  ;;  %v1006_v23 = vadd.f32 %v1955_v57, %v970_v17 }
 0x117   : > { %v812_v14 = vpop.f32.mrf.mxu1  ;;  %v756_v18 = vpop.f32.mrf.mxu2 }
 0x118   : > { %v1570_v19 = vpack.c.bf16 %v1053_v16, %v1052_v15  ;;  %v846_v22 = vadd.f32 %v845_v9, %v756_v18  ;;  %v1038_v29 = vmax.f32 %v1006_v23, 0.0 }
 0x119   : > { %v718_v20 = vpop.f32.mrf.mxu0 }
 0x11a   : > { %v808_v21 = vadd.f32 %v807_v48, %v718_v20  ;;  %1594 = vst [vmem:[%s1967_s26 + $0x68] sm:$0xff] %v1570_v19   ;;  %v986_v28 = vmul.f32 %v1949_v54, %v846_v22 }
 0x11c   : > { %v971_v25 = vmul.f32 %v1949_v54, %v808_v21  ;;  %v1022_v36 = vadd.f32 %v1955_v57, %v986_v28 }
 0x11e   : > { %v1007_v26 = vadd.f32 %v1955_v57, %v971_v25  ;;  %v1054_v43 = vmax.f32 %v1022_v36, 0.0 }
 0x11f   : > { %v815_v27 = vpop.f32.mrf.mxu1  ;;  %v758_v31 = vpop.f32.mrf.mxu2 }
 0x120   : > { %v1039_v30 = vmax.f32 %v1007_v26, 0.0  ;;  %v816_v32 = vadd.f32 %v815_v27, %v1957_v58  ;;  %v848_v33 = vadd.f32 %v847_v24, %v758_v31 }
 0x121   : > { %v721_v34 = vpop.f32.mrf.mxu0 }
 0x122   : > { %v1535_v35 = vpack.c.bf16 %v1039_v30, %v1038_v29  ;;  %v987_v37 = vmul.f32 %v1949_v54, %v848_v33  ;;  %v811_v38 = vadd.f32 %v810_v0, %v721_v34  ;;  %v974_v39 = vmul.f32 %v1949_v54, %v816_v32  ;;  %v852_v0 = vpop.f32.mrf.mxu3 }
 0x124   : > { %1587 = vst [vmem:[%s1967_s26 + $0x30] sm:$0xff] %v1535_v35   ;;  %v1023_v40 = vadd.f32 %v1955_v57, %v987_v37  ;;  %v972_v45 = vmul.f32 %v1949_v54, %v811_v38  ;;  %v1010_v47 = vadd.f32 %v1955_v57, %v974_v39 }
 0x126   : > { %v1055_v44 = vmax.f32 %v1023_v40, 0.0  ;;  %v1008_v55 = vadd.f32 %v1955_v57, %v972_v45  ;;  %v1042_v56 = vmax.f32 %v1010_v47, 0.0 }
 0x127   : > { %v817_v42 = vpop.f32.mrf.mxu1  ;;  %v761_v46 = vpop.f32.mrf.mxu2 }
 0x128   : > { %v818_v58 = vadd.f32 %v817_v42, %v1965_v4  ;;  %v1575_v48 = vpack.c.bf16 %v1055_v44, %v1054_v43  ;;  %v851_v53 = vadd.f32 %v850_v41, %v761_v46  ;;  %v1040_v63 = vmax.f32 %v1008_v55, 0.0 }
 0x129   : > { %v723_v50 = vpop.f32.mrf.mxu0 }
 0x12a   : > { %v975_v49 = vmul.f32 %v1949_v54, %v818_v58  ;;  %v813_v51 = vadd.f32 %v812_v14, %v723_v50  ;;  %1595 = vst [vmem:[%s1967_s26 + $0x70] sm:$0xff] %v1575_v48   ;;  %v988_v62 = vmul.f32 %v1949_v54, %v851_v53 }
 0x12c   : > { %v1011_v52 = vadd.f32 %v1955_v57, %v975_v49  ;;  %v973_v4 = vmul.f32 %v1949_v54, %v813_v51  ;;  %v1024_v6 = vadd.f32 %v1955_v57, %v988_v62 }
 0x12e   : > { %v1043_v59 = vmax.f32 %v1011_v52, 0.0  ;;  %v1009_v60 = vadd.f32 %v1955_v57, %v973_v4  ;;  %v1056_v9 = vmax.f32 %v1024_v6, 0.0 }
 0x12f   : > { %v763_v2 = vpop.f32.mrf.mxu2 }
 0x130   : > { %v1545_v61 = vpack.c.bf16 %v1043_v59, %v1042_v56  ;;  %v1041_v1 = vmax.f32 %v1009_v60, 0.0  ;;  %v853_v3 = vadd.f32 %v852_v0, %v763_v2 }
 0x132   : > { %1589 = vst [vmem:[%s1967_s26 + $0x40] sm:$0xff] %v1545_v61   ;;  %v1540_v5 = vpack.c.bf16 %v1041_v1, %v1040_v63  ;;  %v989_v7 = vmul.f32 %v1949_v54, %v853_v3 }
 0x134   : > { %1588 = vst [vmem:[%s1967_s26 + $0x38] sm:$0xff] %v1540_v5   ;;  %v1025_v8 = vadd.f32 %v1955_v57, %v989_v7 }
 0x136   : > { %v1057_v10 = vmax.f32 %v1025_v8, 0.0 }
 0x138   : > { %v1580_v11 = vpack.c.bf16 %v1057_v10, %v1056_v9 }
 0x13a   : > { %1596 = vst [vmem:[%s1967_s26 + $0x78] sm:$0xff] %v1580_v11  }
 0x13b   : > { %1694 = shalt.err (!%p1691_p5)
}
 0x13c   : > { %s1748_s22 = smov 64   ;;  %s1749_s24 = smov 4  }
 0x13d   : > { %1607 = dma.vmem_to_hbm [thread:$0]  (%p1815_p4), %s1137_s18, 2048, %s1139_s7, %s1123_s8, %s1748_s22, %s1748_s22, %s1749_s24  }
 0x13e PF: > { %p1613_p6 = scmp.ge.s32.totalorder %s1745_s20, 2  ;;  %s1153_s26 = sand.u32 1, %s1725_s15  }
 0x13f   : > { %s1154_s29 = scalar_lea.sflag [#allocation4], %s1153_s26 }
 0x140   : > { %p1610_p7 = pnand %p1613_p6, %p1822_p8 }
 0x142   : > { %p1611_p9 = pneg %p1610_p7 }
 0x144   : > { %1720 = dma.done.wait (%p1611_p9), %s1154_s29, 2048  }
 0x145   : > { %1722 = vsyncadd (%p1611_p9), %s1154_s29, 4294965248  ;;  %s17_s20 = sadd.s32 1, %s1745_s20   ;;  %s2093_s15 = smov %s1729_s16 }
 0x146   : > { %p14_p10 = scmp.ge.s32.totalorder %s17_s20, 10   ;;  %s2094_s16 = smov %s1733_s17 }
 0x147   : > { %s2095_s17 = smov %s1828_s28  ;;  %s2096_s18 = smov %s1741_s19 }
 0x148   : > { %s2097_s19 = smov %s2099_s23  ;;  %16 = sbr.rel (!%p14_p10) target bundleno = 4 (0x4), region = 88 }
 0x14d   :  { %1160 = vsyncpa [#allocation4], 1 }
 0x14e   :  { %1162 = vsyncpa [#allocation4 + $0x1], 1 }

</bundles_post_ra>
